<compile_context>
chip_gen: v5e
topology: v5e:2x2
jax: 0.10.0
libtpu: 0.0.40
codegen_flags: <defaults>
</compile_context>

<pallas_src>
import jax
import jax.numpy as jnp
from jax.experimental import pallas as pl
from jax.experimental.pallas import tpu as pltpu


def _round_up(x, m):
    return ((x + m - 1) // m) * m


def _vmem_capacity_bytes():
    """Physical VMEM of the current TPU generation (fallback: v7x per-TC size)."""
    try:
        return int(pltpu.get_tpu_info().vmem_capacity_bytes)
    except Exception:
        return 64 << 20


# ---------------------------------------------------------------------------
# Fused kernel: CSR (per-destination) GINEConv aggregation + MLP + LayerNorm.
#
# Grid: one step per tile of TN destination nodes ("parallel" axis).
#   row_ptr_ref : SMEM (N_pad+1,) int32  CSR offsets of edges sorted by dst
#   src_ref     : SMEM (E_pad,)   int32  source node of each dst-sorted edge
#   node_ref    : VMEM (N_pad, D) f32    node features (resident, constant index)
#   edge_ref    : VMEM (E_pad, D) f32    dst-sorted edge features (resident)
#   w1_ref/w2_ref : VMEM (D, D)          MLP weights (pre-transposed, matmul dtype)
#   prm_ref     : VMEM (8, D) f32        rows [b1, b2, gamma, beta, 0, 0, 0, 0]
#   out_ref     : VMEM (TN, D) f32       output tile
#   agg_ref     : VMEM (TN, D) f32       per-tile aggregation scratch
# ---------------------------------------------------------------------------
def gin_fused_kernel(row_ptr_ref, src_ref,
                     node_ref, edge_ref, w1_ref, w2_ref, prm_ref,
                     out_ref, agg_ref):
    tn, d = agg_ref.shape
    base = pl.program_id(0) * tn

    # ---- GINEConv aggregation: agg[v] = sum_{e=(u,v)} (node[u] + edge[e]) ----
    # Per-destination accumulation in a vreg carry; exactly one store per row.
    def per_dst(r, carry):
        v = base + r
        lo = row_ptr_ref[v]
        hi = row_ptr_ref[v + 1]

        def per_edge(e, acc):
            s = src_ref[e]
            return acc + (node_ref[pl.ds(s, 1), :] + edge_ref[pl.ds(e, 1), :])

        acc = jax.lax.fori_loop(lo, hi, per_edge,
                                jnp.zeros((1, d), jnp.float32))
        agg_ref[pl.ds(r, 1), :] = acc
        return carry

    jax.lax.fori_loop(0, tn, per_dst, 0)

    # ---- fused MLP (Linear -> ReLU -> Linear) + LayerNorm epilogue ----------
    mm_dtype = w1_ref.dtype            # bf16 by default, f32 accumulation below
    h = jnp.dot(agg_ref[...].astype(mm_dtype), w1_ref[...],
                preferred_element_type=jnp.float32) + prm_ref[0:1, :]
    h = jnp.maximum(h, 0.0)
    h = jnp.dot(h.astype(mm_dtype), w2_ref[...],
                preferred_element_type=jnp.float32) + prm_ref[1:2, :]
    # LayerNorm over emb_dim (eps = 1e-5, biased variance, affine), in f32.
    mean = jnp.mean(h, axis=-1, keepdims=True)
    c = h - mean
    var = jnp.mean(c * c, axis=-1, keepdims=True)
    y = c * jax.lax.rsqrt(var + 1e-5) * prm_ref[2:3, :] + prm_ref[3:4, :]
    out_ref[...] = y.astype(out_ref.dtype)
    # GINLayer default: activation=None -> nothing more to do.


# ---------------------------------------------------------------------------
# Wrapper
# ---------------------------------------------------------------------------
def gin_layer(node_feats, edge_feats, src, dst, params, *,
              node_tile=None, matmul_dtype=jnp.bfloat16):
    """GINLayer forward.

    node_feats: (N, D) f32; edge_feats: (E, D) f32; src/dst: (E,) int32.
    params = (w1, b1, w2, b2, gamma, beta) with w1/w2 pre-transposed for x @ W.
    """
    N, D = node_feats.shape
    E = edge_feats.shape[0]
    w1, b1, w2, b2, gamma, beta = params
    f32 = jnp.float32

    # Node tile: lane-dense, >=8-row aligned; single grid step for small graphs.
    TN = node_tile if node_tile is not None else (256 if N > 256 else _round_up(N, 8))
    TN = _round_up(TN, 8)
    N_pad = _round_up(N, TN)
    E_pad = max(_round_up(E, 8), 8)

    # ---- host-side glue: build CSR by destination ----------------------------
    order = jnp.argsort(dst.astype(jnp.int32))
    src_sorted = src.astype(jnp.int32)[order]
    edge_sorted = edge_feats.astype(f32)[order]
    counts = jnp.zeros((N,), jnp.int32).at[dst].add(1)
    row_ptr = jnp.concatenate(
        [jnp.zeros((1,), jnp.int32), jnp.cumsum(counts).astype(jnp.int32)])
    # Padded destination rows get the empty edge range [E, E).
    row_ptr_pad = jnp.full((N_pad + 1,), E, jnp.int32).at[:N + 1].set(row_ptr)
    src_pad = jnp.zeros((E_pad,), jnp.int32).at[:E].set(src_sorted)

    node_p = jnp.zeros((N_pad, D), f32).at[:N].set(node_feats.astype(f32))
    edge_p = jnp.zeros((E_pad, D), f32).at[:E].set(edge_sorted)

    w1c = w1.astype(matmul_dtype)
    w2c = w2.astype(matmul_dtype)
    prm = jnp.zeros((8, D), f32)
    prm = prm.at[0].set(b1.astype(f32)).at[1].set(b2.astype(f32))
    prm = prm.at[2].set(gamma.astype(f32)).at[3].set(beta.astype(f32))

    # ---- VMEM budget: per-generation cap instead of a hard 32 MiB clamp ------
    mm_bytes = jnp.dtype(matmul_dtype).itemsize
    resident = 4 * (N_pad + E_pad) * D + 2 * mm_bytes * D * D + 4 * 8 * D
    per_tile = 4 * TN * D * 3                 # double-buffered out tile + agg scratch
    need = 2 * resident + per_tile + (4 << 20)
    vmem_limit = int(min(max(need, 16 << 20), int(0.75 * _vmem_capacity_bytes())))

    out = pl.pallas_call(
        gin_fused_kernel,
        out_shape=jax.ShapeDtypeStruct((N_pad, D), f32),
        grid_spec=pltpu.PrefetchScalarGridSpec(
            num_scalar_prefetch=2,
            grid=(N_pad // TN,),
            in_specs=[
                pl.BlockSpec((N_pad, D), lambda i, *_: (0, 0)),   # node feats (resident)
                pl.BlockSpec((E_pad, D), lambda i, *_: (0, 0)),   # dst-sorted edge feats
                pl.BlockSpec((D, D), lambda i, *_: (0, 0)),       # w1
                pl.BlockSpec((D, D), lambda i, *_: (0, 0)),       # w2
                pl.BlockSpec((8, D), lambda i, *_: (0, 0)),       # packed b1/b2/gamma/beta
            ],
            out_specs=pl.BlockSpec((TN, D), lambda i, *_: (i, 0)),
            scratch_shapes=[pltpu.VMEM((TN, D), jnp.float32)],
        ),
        compiler_params=pltpu.CompilerParams(
            dimension_semantics=("parallel",),        # disjoint dst tiles -> 2-TC sharding
            vmem_limit_bytes=vmem_limit,
        ),
        cost_estimate=pl.CostEstimate(
            flops=int(2 * E * D + 4 * N_pad * D * D),
            transcendentals=int(N_pad),
            bytes_accessed=int(4 * (2 * N_pad + E_pad) * D + 2 * mm_bytes * D * D
                               + 4 * (E_pad + N_pad + 1) + 4 * 8 * D),
        ),
    )(row_ptr_pad, src_pad, node_p, edge_p, w1c, w2c, prm)

    return out[:N]


# ---------------------------------------------------------------------------
# Pure-JAX f32 reference (same math, scatter-add formulation) for validation.
# ---------------------------------------------------------------------------
def gin_layer_ref(node_feats, edge_feats, src, dst, params):
    N, D = node_feats.shape
    w1, b1, w2, b2, gamma, beta = params
    msg = node_feats[src] + edge_feats
    agg = jnp.zeros((N, D), jnp.float32).at[dst].add(msg)
    h = jnp.maximum(agg @ w1 + b1, 0.0) @ w2 + b2
    mean = jnp.mean(h, -1, keepdims=True)
    var = jnp.mean((h - mean) ** 2, -1, keepdims=True)
    return (h - mean) / jnp.sqrt(var + 1e-5) * gamma + beta


if __name__ == "__main__":
    emb_dim = 128   # lane-aligned feature dim
    N = 20          # total nodes in the batch of graphs (exercises row padding)
    E = 50          # total edges in the batch of graphs (exercises edge padding)

    key = jax.random.PRNGKey(0)
    k_node, k_edge, k_src, k_dst, k_w1, k_b1, k_w2, k_b2 = jax.random.split(key, 8)

    node_feats = jax.random.normal(k_node, (N, emb_dim), jnp.float32)
    # edge_feats arrive as dense embedded edge features of shape (E, emb_dim).
    edge_feats = jax.random.normal(k_edge, (E, emb_dim), jnp.float32)
    src = jax.random.randint(k_src, (E,), 0, N, jnp.int32)
    dst = jax.random.randint(k_dst, (E,), 0, N, jnp.int32)

    # Deterministic parameter init (shapes as in nn.Linear(emb,emb) x2 + LayerNorm).
    # Weights stored pre-transposed so the kernel computes x @ W.
    bound = 1.0 / jnp.sqrt(emb_dim)
    w1 = jax.random.uniform(k_w1, (emb_dim, emb_dim), jnp.float32, -bound, bound)
    b1 = jax.random.uniform(k_b1, (emb_dim,), jnp.float32, -bound, bound)
    w2 = jax.random.uniform(k_w2, (emb_dim, emb_dim), jnp.float32, -bound, bound)
    b2 = jax.random.uniform(k_b2, (emb_dim,), jnp.float32, -bound, bound)
    gamma = jnp.ones((emb_dim,), jnp.float32)
    beta = jnp.zeros((emb_dim,), jnp.float32)
    params = (w1, b1, w2, b2, gamma, beta)

    ref = gin_layer_ref(node_feats, edge_feats, src, dst, params)

    # Fast path: bf16 MXU inputs, f32 accumulation (per the perf review the
    # self-check tolerance is loosened for this path).
    out = jax.block_until_ready(gin_layer(node_feats, edge_feats, src, dst, params))
    assert out.shape == (N, emb_dim) and out.dtype == jnp.float32
    assert jnp.allclose(out, ref, atol=5e-2, rtol=5e-2), "bf16 path mismatch vs reference"

    # Full-precision validation path (tight tolerance).
    out_f32 = jax.block_until_ready(
        gin_layer(node_feats, edge_feats, src, dst, params, matmul_dtype=jnp.float32))
    assert jnp.allclose(out_f32, ref, atol=2e-4, rtol=2e-4), "f32 path mismatch vs reference"

    print("KERNEL_OK")
</pallas_src>

<mosaic_0001>
module attributes {stable_mosaic.version = 11 : i64} {
  func.func @gin_fused_kernel(%arg0: i32, %arg1: memref<25xi32, #tpu.memory_space<smem>>, %arg2: memref<56xi32, #tpu.memory_space<smem>>, %arg3: memref<24x128xf32, #tpu.memory_space<vmem>>, %arg4: memref<56x128xf32, #tpu.memory_space<vmem>>, %arg5: memref<128x128xbf16, #tpu.memory_space<vmem>>, %arg6: memref<128x128xbf16, #tpu.memory_space<vmem>>, %arg7: memref<8x128xf32, #tpu.memory_space<vmem>>, %arg8: memref<24x128xf32, #tpu.memory_space<vmem>>, %arg9: memref<24x128xf32, #tpu.memory_space<vmem>>) attributes {dimension_semantics = [#tpu.dimension_semantics<parallel>], iteration_bounds = array<i64: 1>, scalar_prefetch = 2 : i64, scratch_operands = 1 : i64, tpu.core_type = #tpu.core_type<tc>, window_params = [{pipeline_mode = #tpu.pipeline_mode<synchronous>, transform_indices = @transform_0, window_bounds = array<i64: 24, 128>}, {pipeline_mode = #tpu.pipeline_mode<synchronous>, transform_indices = @transform_1, window_bounds = array<i64: 56, 128>}, {pipeline_mode = #tpu.pipeline_mode<synchronous>, transform_indices = @transform_2, window_bounds = array<i64: 128, 128>}, {pipeline_mode = #tpu.pipeline_mode<synchronous>, transform_indices = @transform_3, window_bounds = array<i64: 128, 128>}, {pipeline_mode = #tpu.pipeline_mode<synchronous>, transform_indices = @transform_4, window_bounds = array<i64: 8, 128>}, {transform_indices = @transform_5, window_bounds = array<i64: 24, 128>}]} {
    %c24_i32 = arith.constant 24 : i32
    %0 = arith.muli %arg0, %c24_i32 : i32
    %c0_i32 = arith.constant 0 : i32
    %c24_i32_0 = arith.constant 24 : i32
    %1 = arith.addi %c0_i32, %c24_i32_0 : i32
    %c1_i32 = arith.constant 1 : i32
    scf.for %arg10 = %c0_i32 to %1 step %c1_i32  : i32 {
      %40 = arith.addi %0, %arg10 : i32
      %41 = arith.index_cast %40 : i32 to index
      %42 = memref.load %arg1[%41] : memref<25xi32, #tpu.memory_space<smem>>
      %c1_i32_21 = arith.constant 1 : i32
      %43 = arith.addi %40, %c1_i32_21 : i32
      %44 = arith.index_cast %43 : i32 to index
      %45 = memref.load %arg1[%44] : memref<25xi32, #tpu.memory_space<smem>>
      %cst_22 = arith.constant 0.000000e+00 : f32
      %46 = vector.broadcast %cst_22 : f32 to vector<1x128xf32>
      %47 = arith.subi %45, %42 : i32
      %48 = arith.addi %42, %47 : i32
      %c1_i32_23 = arith.constant 1 : i32
      %49 = scf.for %arg11 = %42 to %48 step %c1_i32_23 iter_args(%arg12 = %46) -> (vector<1x128xf32>)  : i32 {
        %52 = arith.index_cast %arg11 : i32 to index
        %53 = memref.load %arg2[%52] : memref<56xi32, #tpu.memory_space<smem>>
        %54 = arith.index_cast %53 : i32 to index
        %c0_25 = arith.constant 0 : index
        %55 = vector.load %arg3[%54, %c0_25] : memref<24x128xf32, #tpu.memory_space<vmem>>, vector<1x128xf32>
        %56 = arith.index_cast %arg11 : i32 to index
        %c0_26 = arith.constant 0 : index
        %57 = vector.load %arg4[%56, %c0_26] : memref<56x128xf32, #tpu.memory_space<vmem>>, vector<1x128xf32>
        %58 = arith.addf %55, %57 : vector<1x128xf32>
        %59 = arith.addf %arg12, %58 : vector<1x128xf32>
        scf.yield %59 : vector<1x128xf32>
      }
      %50 = arith.index_cast %arg10 : i32 to index
      %c0_24 = arith.constant 0 : index
      %51 = vector.load %arg9[%50, %c0_24] : memref<24x128xf32, #tpu.memory_space<vmem>>, vector<1x128xf32>
      tpu.vector_store %arg9[%50, %c0_24], %49 {strides = array<i32>} : memref<24x128xf32, #tpu.memory_space<vmem>>, vector<1x128xf32>,
    }
    %c24_i32_1 = arith.constant 24 : i32
    %c0 = arith.constant 0 : index
    %c0_2 = arith.constant 0 : index
    %2 = vector.load %arg9[%c0, %c0_2] : memref<24x128xf32, #tpu.memory_space<vmem>>, vector<24x128xf32>
    %3 = arith.truncf %2 : vector<24x128xf32> to vector<24x128xbf16>
    %c0_3 = arith.constant 0 : index
    %c0_4 = arith.constant 0 : index
    %4 = vector.load %arg5[%c0_3, %c0_4] : memref<128x128xbf16, #tpu.memory_space<vmem>>, vector<128x128xbf16>
    %cst = arith.constant dense<0.000000e+00> : vector<24x128xf32>
    %5 = tpu.matmul %3, %4, %cst {dimension_numbers = #tpu.dot_dimension_numbers<[1], [0], [0], [1], [0, 0, 1, 1], [], []>} : vector<24x128xbf16>, vector<128x128xbf16>, vector<24x128xf32> -> vector<24x128xf32>
    %c0_5 = arith.constant 0 : index
    %c0_6 = arith.constant 0 : index
    %6 = vector.load %arg7[%c0_5, %c0_6] : memref<8x128xf32, #tpu.memory_space<vmem>>, vector<1x128xf32>
    %7 = vector.broadcast %6 : vector<1x128xf32> to vector<24x128xf32>
    %8 = arith.addf %5, %7 : vector<24x128xf32>
    %cst_7 = arith.constant 0.000000e+00 : f32
    %9 = vector.broadcast %cst_7 : f32 to vector<24x128xf32>
    %10 = arith.maximumf %8, %9 : vector<24x128xf32>
    %11 = arith.truncf %10 : vector<24x128xf32> to vector<24x128xbf16>
    %c0_8 = arith.constant 0 : index
    %c0_9 = arith.constant 0 : index
    %12 = vector.load %arg6[%c0_8, %c0_9] : memref<128x128xbf16, #tpu.memory_space<vmem>>, vector<128x128xbf16>
    %cst_10 = arith.constant dense<0.000000e+00> : vector<24x128xf32>
    %13 = tpu.matmul %11, %12, %cst_10 {dimension_numbers = #tpu.dot_dimension_numbers<[1], [0], [0], [1], [0, 0, 1, 1], [], []>} : vector<24x128xbf16>, vector<128x128xbf16>, vector<24x128xf32> -> vector<24x128xf32>
    %c1 = arith.constant 1 : index
    %c0_11 = arith.constant 0 : index
    %14 = vector.load %arg7[%c1, %c0_11] : memref<8x128xf32, #tpu.memory_space<vmem>>, vector<1x128xf32>
    %15 = vector.broadcast %14 : vector<1x128xf32> to vector<24x128xf32>
    %16 = arith.addf %13, %15 : vector<24x128xf32>
    %cst_12 = arith.constant dense<0.000000e+00> : vector<24xf32>
    %17 = vector.multi_reduction <add>, %16, %cst_12 [1] : vector<24x128xf32> to vector<24xf32>
    %18 = vector.shape_cast %17 : vector<24xf32> to vector<24x1xf32>
    %cst_13 = arith.constant 1.280000e+02 : f32
    %19 = vector.broadcast %cst_13 : f32 to vector<24x1xf32>
    %20 = arith.divf %18, %19 : vector<24x1xf32>
    %21 = vector.broadcast %20 : vector<24x1xf32> to vector<24x128xf32>
    %22 = arith.subf %16, %21 : vector<24x128xf32>
    %23 = arith.mulf %22, %22 : vector<24x128xf32>
    %cst_14 = arith.constant dense<0.000000e+00> : vector<24xf32>
    %24 = vector.multi_reduction <add>, %23, %cst_14 [1] : vector<24x128xf32> to vector<24xf32>
    %25 = vector.shape_cast %24 : vector<24xf32> to vector<24x1xf32>
    %cst_15 = arith.constant 1.280000e+02 : f32
    %26 = vector.broadcast %cst_15 : f32 to vector<24x1xf32>
    %27 = arith.divf %25, %26 : vector<24x1xf32>
    %cst_16 = arith.constant 9.99999974E-6 : f32
    %28 = vector.broadcast %cst_16 : f32 to vector<24x1xf32>
    %29 = arith.addf %27, %28 : vector<24x1xf32>
    %30 = math.rsqrt %29 : vector<24x1xf32>
    %31 = vector.broadcast %30 : vector<24x1xf32> to vector<24x128xf32>
    %32 = arith.mulf %22, %31 : vector<24x128xf32>
    %c2 = arith.constant 2 : index
    %c0_17 = arith.constant 0 : index
    %33 = vector.load %arg7[%c2, %c0_17] : memref<8x128xf32, #tpu.memory_space<vmem>>, vector<1x128xf32>
    %34 = vector.broadcast %33 : vector<1x128xf32> to vector<24x128xf32>
    %35 = arith.mulf %32, %34 : vector<24x128xf32>
    %c3 = arith.constant 3 : index
    %c0_18 = arith.constant 0 : index
    %36 = vector.load %arg7[%c3, %c0_18] : memref<8x128xf32, #tpu.memory_space<vmem>>, vector<1x128xf32>
    %37 = vector.broadcast %36 : vector<1x128xf32> to vector<24x128xf32>
    %38 = arith.addf %35, %37 : vector<24x128xf32>
    %c0_19 = arith.constant 0 : index
    %c0_20 = arith.constant 0 : index
    %39 = vector.load %arg8[%c0_19, %c0_20] : memref<24x128xf32, #tpu.memory_space<vmem>>, vector<24x128xf32>
    tpu.vector_store %arg8[%c0_19, %c0_20], %38 {strides = array<i32>} : memref<24x128xf32, #tpu.memory_space<vmem>>, vector<24x128xf32>,
    return
  }
  func.func @transform_0(%arg0: i32, %arg1: memref<25xi32, #tpu.memory_space<smem>>, %arg2: memref<56xi32, #tpu.memory_space<smem>>) -> (i32, i32) {
    %c0_i32 = arith.constant 0 : i32
    %c0_i32_0 = arith.constant 0 : i32
    %c0_i32_1 = arith.constant 0 : i32
    return %c0_i32, %c0_i32_0 : i32, i32
  }
  func.func @transform_1(%arg0: i32, %arg1: memref<25xi32, #tpu.memory_space<smem>>, %arg2: memref<56xi32, #tpu.memory_space<smem>>) -> (i32, i32) {
    %c0_i32 = arith.constant 0 : i32
    %c0_i32_0 = arith.constant 0 : i32
    %c0_i32_1 = arith.constant 0 : i32
    return %c0_i32, %c0_i32_0 : i32, i32
  }
  func.func @transform_2(%arg0: i32, %arg1: memref<25xi32, #tpu.memory_space<smem>>, %arg2: memref<56xi32, #tpu.memory_space<smem>>) -> (i32, i32) {
    %c0_i32 = arith.constant 0 : i32
    %c0_i32_0 = arith.constant 0 : i32
    %c0_i32_1 = arith.constant 0 : i32
    return %c0_i32, %c0_i32_0 : i32, i32
  }
  func.func @transform_3(%arg0: i32, %arg1: memref<25xi32, #tpu.memory_space<smem>>, %arg2: memref<56xi32, #tpu.memory_space<smem>>) -> (i32, i32) {
    %c0_i32 = arith.constant 0 : i32
    %c0_i32_0 = arith.constant 0 : i32
    %c0_i32_1 = arith.constant 0 : i32
    return %c0_i32, %c0_i32_0 : i32, i32
  }
  func.func @transform_4(%arg0: i32, %arg1: memref<25xi32, #tpu.memory_space<smem>>, %arg2: memref<56xi32, #tpu.memory_space<smem>>) -> (i32, i32) {
    %c0_i32 = arith.constant 0 : i32
    %c0_i32_0 = arith.constant 0 : i32
    %c0_i32_1 = arith.constant 0 : i32
    return %c0_i32, %c0_i32_0 : i32, i32
  }
  func.func @transform_5(%arg0: i32, %arg1: memref<25xi32, #tpu.memory_space<smem>>, %arg2: memref<56xi32, #tpu.memory_space<smem>>) -> (i32, i32) {
    %c0_i32 = arith.constant 0 : i32
    %c0_i32_0 = arith.constant 0 : i32
    return %arg0, %c0_i32 : i32, i32
  }
}

</mosaic_0001>

<bundles_post_ra>
// kernel: tpu_custom_call.1
= control target key start
LH: loop header
LB: loop body
LE: loop exit
PB: predicated region body
PF: predicated region fallthrough
CT: control target
= control target key end

     0   :  { %s797_s30 = smov [#allocation4]   ;;  %s798_s8 = smov [#allocation5]   ;;  %s898_s0 = inlined_call_operand.hbm [shape: s32[25], index: 0, kind: input, shape index: {}]   ;;  %s899_s2 = inlined_call_operand.hbm [shape: f32[24,128], index: 2, kind: input, shape index: {}]   ;;  %s900_s3 = inlined_call_operand.hbm [shape: f32[56,128], index: 3, kind: input, shape index: {}]   ;;  %s901_s4 = inlined_call_operand.hbm [shape: bf16[128,128], index: 4, kind: input, shape index: {}]   ;;  %s902_s5 = inlined_call_operand.hbm [shape: bf16[128,128], index: 5, kind: input, shape index: {}]   ;;  %s903_s6 = inlined_call_operand.hbm [shape: f32[8,128], index: 6, kind: input, shape index: {}]   ;;  %s904_s7 = inlined_call_operand.hbm [shape: f32[24,128], index: 7, kind: output, shape index: {}]   ;;  %s905_s1 = inlined_call_operand.hbm [shape: s32[56], index: 1, kind: input, shape index: {}]  }
   0x1   :  { %s13_s26 = sshll.u32 %s898_s0, 4  ;;  %s18_s29 = sshll.u32 %s905_s1, 4  ;;  %s14_s26 = int_to_ptr.hbm [resolvable:$true] %s13_s26  ;;  %s19_s29 = int_to_ptr.hbm [resolvable:$true] %s18_s29 }
   0x2   :  { %16 = dma.hbm_to_smem %s14_s26, 16, %s797_s30, [#allocation3] }
   0x3   :  { %21 = dma.hbm_to_smem %s19_s29, 16, %s798_s8, [#allocation3] }
   0x4   :  { %771 = dma.done.wait [#allocation3], 32 }
   0x5   :  { %772 = vsyncadd [#allocation3], 4294967264 }
   0x6   :  { %24 = sfence }
   0x7   :  { %25 = vsyncpa [#allocation7], 0 }
   0x8   :  { %26 = vsyncpa [#allocation10], 0 }
   0x9   :  { %27 = vsyncpa [#allocation13], 0 }
   0xa   :  { %28 = vsyncpa [#allocation8], 0  ;;  %s46_s0 = sshll.u32 %s900_s3, 4  ;;  %s799_s11 = smov [#allocation9]   ;;  %s47_s0 = int_to_ptr.hbm [resolvable:$true] %s46_s0 }
   0xb   :  { %s48_s1 = sshll.u32 %s799_s11, 4  ;;  %s800_s12 = smov 128   ;;  %s49_s1 = int_to_ptr.vmem [resolvable:$true] %s48_s1 }
   0xc   :  { %s801_s13 = smov 8   ;;  %s72_s16 = sshll.u32 %s902_s5, 4  ;;  %s73_s16 = int_to_ptr.hbm [resolvable:$true] %s72_s16 }
   0xd   :  { %54 = dma.hbm_to_vmem [thread:$0]  %s47_s0, 896, %s49_s1, [#allocation10], %s800_s12, %s800_s12, %s801_s13  }
   0xe   :  { %s802_s17 = smov [#allocation12]   ;;  %s33_s3 = sshll.u32 %s899_s2, 4  ;;  %s34_s3 = int_to_ptr.hbm [resolvable:$true] %s33_s3 }
   0xf   :  { %s74_s18 = sshll.u32 %s802_s17, 4  ;;  %s803_s21 = smov 64   ;;  %s75_s18 = int_to_ptr.vmem [resolvable:$true] %s74_s18 }
  0x10   :  { %s804_s22 = smov 4   ;;  %s59_s25 = sshll.u32 %s901_s4, 4  ;;  %s60_s25 = int_to_ptr.hbm [resolvable:$true] %s59_s25 }
  0x11   :  { %80 = dma.hbm_to_vmem [thread:$0]  %s73_s16, 1024, %s75_s18, [#allocation13], %s803_s21, %s803_s21, %s804_s22  }
  0x12   :  { %s805_s26 = smov [#allocation6]   ;;  %s806_s5 = smov [#allocation11]  }
  0x13   :  { %s35_s27 = sshll.u32 %s805_s26, 4  ;;  %s61_s28 = sshll.u32 %s806_s5, 4  ;;  %s36_s27 = int_to_ptr.vmem [resolvable:$true] %s35_s27  ;;  %s62_s28 = int_to_ptr.vmem [resolvable:$true] %s61_s28 }
  0x14   :  { %41 = dma.hbm_to_vmem [thread:$0]  %s34_s3, 384, %s36_s27, [#allocation7], %s800_s12, %s800_s12, %s801_s13  }
  0x15   :  { %s86_s30 = sshll.u32 %s903_s6, 4  ;;  %s807_s8 = smov [#allocation14]   ;;  %s87_s30 = int_to_ptr.hbm [resolvable:$true] %s86_s30 }
  0x16   :  { %67 = dma.hbm_to_vmem [thread:$0]  %s60_s25, 1024, %s62_s28, [#allocation10], %s803_s21, %s803_s21, %s804_s22  }
  0x17   :  { %s88_s9 = sshll.u32 %s807_s8, 4  ;;  %s89_s9 = int_to_ptr.vmem [resolvable:$true] %s88_s9 }
  0x18   :  { %91 = dma.hbm_to_vmem [thread:$0]  %s87_s30, 128, %s89_s9, [#allocation13]  }
  0x19   :  { %773 = dma.done.wait [#allocation7], 384  }
  0x1a   :  { %774 = vsyncadd [#allocation7], 4294966912 }
  0x1b   :  { %775 = dma.done.wait [#allocation10], 1920  }
  0x1c   :  { %776 = vsyncadd [#allocation10], 4294965376 }
  0x1d   :  { %777 = dma.done.wait [#allocation13], 1152  }
  0x1e   :  { %778 = vsyncadd [#allocation13], 4294966144  ;;  %s877_s4 = smov 0  }
  0x1f LB: > { %s120_s6 = sld [smem:[#allocation4 + %s783_s4]]   ;;  %s884_s10 = sadd.s32 1, %s783_s4   ;;  %v793_v0 = vmov 0.0   ;;  %s783_s4 = sphi %s877_s4, %s906_s4  }
  0x20   : > { %s122_s0 = sld [smem:[#allocation4 + %s884_s10]] }
  0x26   : > { %p422_p0 = scmp.ge.s32.totalorder %s120_s6, %s122_s0 }
  0x27   : > { %s789_s11 = smov (!%p422_p0), %s120_s6  }
  0x28   : > { %424 = sbr.rel (%p422_p0) target bundleno = 59 (0x3b), region = 71 }
  0x2d   : > { %v785_v1 = vmov 0.0  }
  0x2e LB: >> { %s130_s1 = sld [smem:[#allocation5 + %s791_s11]]  ;;  %s133_s14 = scalar_lea.vmem [#allocation9], %s791_s11  ;;  %s791_s11 = sphi %s789_s11, %s126_s11   ;;  %v787_v1 = vphi %v785_v1, %v786_v1  }
  0x2f   : >> { %v134_v2 = vld [vmem:[%s133_s14] sm:$0x1]  ;;  %s126_s11 = sadd.s32 1, %s791_s11  }
  0x30   : >> { %p125_p1 = scmp.ge.s32.totalorder %s126_s11, %s122_s0 }
  0x34   : >> { %s131_s15 = scalar_lea.vmem [#allocation6], %s130_s1 }
  0x35   : >> { %v132_v3 = vld [vmem:[%s131_s15] sm:$0x1] }
  0x36   : >> { %v135_v4 = vadd.f32 %v134_v2, %v132_v3  ;;  %128 = sbr.rel (!%p125_p1) target bundleno = 46 (0x2e), region = 77 }
  0x38   : >> { %v136_v5 = vadd.f32 %v787_v1, %v135_v4  }
  0x3a   : >> { %v786_v1 = vmov %v136_v5   ;;  %v794_v0 = vmov (%p125_p1), %v136_v5  }
  0x3b PF: > { %s137_s16 = scalar_lea.vmem [#allocation2], %s783_s4  ;;  %p115_p2 = scmp.ge.s32.totalorder %s884_s10, 24   ;;  %v795_v0 = vphi %v793_v0, %v794_v0  }
  0x3c   : > { %138 = vst [vmem:[%s137_s16] sm:$0x1] %v795_v0  ;;  %s906_s4 = smov %s884_s10  ;;  %v505_v6 = vld [vmem:[#allocation11 + $0x38] sm:$0xff] (%p115_p2)  ;;  %v504_v7 = vld [vmem:[#allocation11 + $0x30] sm:$0xff] (%p115_p2)  ;;  %v503_v9 = vld [vmem:[#allocation11 + $0x28] sm:$0xff] (%p115_p2)  ;;  %v808_v48 = vmov (%p115_p2), 128.0   ;;  %s809_s17 = smov (%p115_p2), [#allocation15]  }
  0x3d   :  { %117 = sbr.rel (!%p115_p2) target bundleno = 31 (0x1f), region = 88  ;;  %210 = vmatpush.bf16.msra.mxu0 (%p115_p2), %v505_v6  ;;  %514 = vmatpush.bf16.msra.mxu2 (%p115_p2), %v505_v6  ;;  %v513_v8 = vld [vmem:[#allocation12 + $0x38] sm:$0xff] (%p115_p2)  ;;  %v512_v10 = vld [vmem:[#allocation12 + $0x30] sm:$0xff] (%p115_p2)  ;;  %v511_v11 = vld [vmem:[#allocation12 + $0x28] sm:$0xff] (%p115_p2)  ;;  %579 = vrcp.f32 (%p115_p2), %v808_v48  ;;  %s401_s18 = sshll.u32 (%p115_p2), %s809_s17, 4  ;;  %s402_s18 = int_to_ptr.vmem [resolvable:$true] %s401_s18 }
  0x3e   :  { %522 = vmatpush.bf16.msra.mxu3 (%p115_p2), %v513_v8  ;;  %299 = vmatpush.bf16.msra.mxu1 (%p115_p2), %v513_v8  ;;  %v502_v12 = vld [vmem:[#allocation11 + $0x20] sm:$0xff] (%p115_p2)  ;;  %v501_v14 = vld [vmem:[#allocation11 + $0x18] sm:$0xff] (%p115_p2)  ;;  %v500_v16 = vld [vmem:[#allocation11 + $0x10] sm:$0xff] (%p115_p2)  ;;  %s403_s3 = sshll.u32 (%p115_p2), %s904_s7, 4  ;;  %s404_s3 = int_to_ptr.hbm [resolvable:$true] %s403_s3 }
  0x3f   :  { %v510_v13 = vld [vmem:[#allocation12 + $0x20] sm:$0xff] (%p115_p2)  ;;  %v509_v15 = vld [vmem:[#allocation12 + $0x18] sm:$0xff] (%p115_p2)  ;;  %v499_v17 = vld [vmem:[#allocation11 + $0x8] sm:$0xff] (%p115_p2) }
  0x40   :  { %v498_v18 = vld [vmem:[#allocation11] sm:$0xff] (%p115_p2)  ;;  %v508_v24 = vld [vmem:[#allocation12 + $0x10] sm:$0xff] (%p115_p2)  ;;  %v507_v25 = vld [vmem:[#allocation12 + $0x8] sm:$0xff] (%p115_p2) }
  0x41   :  { %211 = vmatpush.bf16.msra.mxu0 (%p115_p2), %v504_v7  ;;  %515 = vmatpush.bf16.msra.mxu2 (%p115_p2), %v504_v7  ;;  %v506_v26 = vld [vmem:[#allocation12] sm:$0xff] (%p115_p2) }
  0x42   :  { %523 = vmatpush.bf16.msra.mxu3 %v512_v10  ;;  %300 = vmatpush.bf16.msra.mxu1 %v512_v10  ;;  %v575_v28 = vld [vmem:[#allocation14] ss:$0 sm:$0xff]  ;;  %v576_v40 = vld [vmem:[#allocation14 + $0x1] ss:$0 sm:$0xff] }
  0x43   :  { %v139_v19 = vld [vmem:[#allocation2] sm:$0xff]  ;;  %v140_v20 = vld [vmem:[#allocation2 + $0x8] sm:$0xff]  ;;  %v141_v21 = vld [vmem:[#allocation2 + $0x10] sm:$0xff]  ;;  %v580_v49 = vpop.eup %579 }
  0x44   :  { %v142_v22 = vpack.c.bf16 %v140_v20, %v139_v19  ;;  %v143_v23 = vpack.c.bf16 %v141_v21, %v141_v21  ;;  %v324_v50 = vmul.f32 128.0, %v580_v49  ;;  %vm328_vm0 = vweird.f32 %v580_v49  ;;  %v577_v20 = vld [vmem:[#allocation14 + $0x2] ss:$0 sm:$0xff] }
  0x45   :  { %212 = vmatpush.bf16.msra.mxu0 %v503_v9  ;;  %516 = vmatpush.bf16.msra.mxu2 %v503_v9 }
  0x46   :  { %524 = vmatpush.bf16.msra.mxu3 %v511_v11  ;;  %301 = vmatpush.bf16.msra.mxu1 %v511_v11  ;;  %v325_v51 = vsub.f32 1.0, %v324_v50 }
  0x48   :  { %v326_v52 = vmul.f32 %v580_v49, %v325_v51 }
  0x49   :  { %213 = vmatpush.bf16.msra.mxu0 %v502_v12  ;;  %517 = vmatpush.bf16.msra.mxu2 %v502_v12 }
  0x4a   :  { %525 = vmatpush.bf16.msra.mxu3 %v510_v13  ;;  %302 = vmatpush.bf16.msra.mxu1 %v510_v13  ;;  %v327_v53 = vadd.f32 %v580_v49, %v326_v52 }
  0x4c   :  { %v329_v54 = vsel %vm328_vm0, %v580_v49, %v327_v53 }
  0x4d   :  { %214 = vmatpush.bf16.msra.mxu0 %v501_v14  ;;  %518 = vmatpush.bf16.msra.mxu2 %v501_v14 }
  0x4e   :  { %526 = vmatpush.bf16.msra.mxu3 %v509_v15  ;;  %303 = vmatpush.bf16.msra.mxu1 %v509_v15 }
  0x51   :  { %215 = vmatpush.bf16.msra.mxu0 %v500_v16  ;;  %519 = vmatpush.bf16.msra.mxu2 %v500_v16 }
  0x52   :  { %527 = vmatpush.bf16.msra.mxu3 %v508_v24  ;;  %304 = vmatpush.bf16.msra.mxu1 %v508_v24  ;;  %v578_v24 = vld [vmem:[#allocation14 + $0x3] ss:$0 sm:$0xff] }
  0x55   :  { %216 = vmatpush.bf16.msra.mxu0 %v499_v17  ;;  %520 = vmatpush.bf16.msra.mxu2 %v499_v17 }
  0x56   :  { %528 = vmatpush.bf16.msra.mxu3 %v507_v25  ;;  %305 = vmatpush.bf16.msra.mxu1 %v507_v25 }
  0x59   :  { %217 = vmatpush.bf16.msra.mxu0 %v498_v18  ;;  %521 = vmatpush.bf16.msra.mxu2 %v498_v18 }
  0x5a   :  { %529 = vmatpush.bf16.msra.mxu3 %v506_v26  ;;  %306 = vmatpush.bf16.msra.mxu1 %v506_v26 }
  0x5c   :  { %218 = vmatmul.bf16.vlgmr.msra.gmra.mxu0 %v142_v22  ;;  %223 = vmatmul.bf16.vlgmr.msra.gmra.mxu2 %v143_v23 }
  0xd9   :  { %v219_v27 = vpop.f32.mrf.mxu0 }
  0xda   :  { %v220_v30 = vadd.f32 %v575_v28, %v219_v27 }
  0xdc   :  { %v228_v35 = vmax.f32 %v220_v30, 0.0 }
  0xdf   :  { %v224_v29 = vpop.f32.mrf.mxu2 }
  0xe0   :  { %v225_v31 = vadd.f32 %v575_v28, %v224_v29 }
  0xe1   :  { %v221_v32 = vpop.f32.mrf.mxu0 }
  0xe2   :  { %v230_v33 = vmax.f32 %v225_v31, 0.0  ;;  %v222_v34 = vadd.f32 %v575_v28, %v221_v32 }
  0xe4   :  { %v229_v36 = vmax.f32 %v222_v34, 0.0  ;;  %v232_v37 = vpack.c.bf16 %v230_v33, %v230_v33 }
  0xe6   :  { %312 = vmatmul.bf16.vlgmr.msra.gmra.mxu3 %v232_v37  ;;  %v231_v38 = vpack.c.bf16 %v229_v36, %v228_v35 }
  0xe7   :  { %v226_v39 = vpop.f32.mrf.mxu2 }
  0xe8   :  { %307 = vmatmul.bf16.vlgmr.msra.gmra.mxu1 %v231_v38 }
 0x165   :  { %v308_v41 = vpop.f32.mrf.mxu1 }
 0x166   :  { %v309_v42 = vadd.f32 %v576_v40, %v308_v41 }
 0x168   :  { %317 = vadd.xlane.f32.xlu0 %v309_v42 }
 0x169   :  { %v313_v43 = vpop.f32.mrf.mxu3 }
 0x16a   :  { %v314_v44 = vadd.f32 %v576_v40, %v313_v43 }
 0x16c   :  { %321 = vadd.xlane.f32.xlu1 %v314_v44 }
 0x16d   :  { %v310_v45 = vpop.f32.mrf.mxu1 }
 0x16e   :  { %v311_v46 = vadd.f32 %v576_v40, %v310_v45 }
 0x170   :  { %319 = vadd.xlane.f32.xlu0 %v311_v46 }
 0x171   :  { %v315_v47 = vpop.f32.mrf.mxu3 }
 0x1db   :  { %v318_v55 = vpop.xlane.xlu0 %317 }
 0x1dc   :  { %v330_v56 = vmul.f32 %v329_v54, %v318_v55 }
 0x1de   :  { %v333_v57 = vsub.f32 %v309_v42, %v330_v56 }
 0x1df   :  { %v322_v61 = vpop.xlane.xlu1 %321 }
 0x1e0   :  { %v336_v58 = vmul.f32 %v333_v57, %v333_v57  ;;  %v332_v63 = vmul.f32 %v329_v54, %v322_v61 }
 0x1e2   :  { %339 = vadd.xlane.f32.xlu1 %v336_v58  ;;  %v335_v1 = vsub.f32 %v314_v44, %v332_v63 }
 0x1e3   :  { %v320_v59 = vpop.xlane.xlu0 %319 }
 0x1e4   :  { %v331_v60 = vmul.f32 %v329_v54, %v320_v59  ;;  %v338_v2 = vmul.f32 %v335_v1, %v335_v1 }
 0x1e6   :  { %v334_v62 = vsub.f32 %v311_v46, %v331_v60 }
 0x1e8   :  { %v337_v0 = vmul.f32 %v334_v62, %v334_v62 }
 0x1ea   :  { %341 = vadd.xlane.f32.xlu2 %v337_v0 }
 0x1f2   :  { %343 = vadd.xlane.f32.xlu2 %v338_v2 }
 0x255   :  { %v340_v3 = vpop.xlane.xlu1 %339 }
 0x256   :  { %v345_v4 = vmul.f32 %v340_v3, %v329_v54 }
 0x258   :  { %v348_v5 = vadd.f32 1e-05, %v345_v4 }
 0x25a   :  { %581 = vrsqrt.f32 %v348_v5  ;;  %vm357_vm2 = vweird.f32 %v348_v5 }
 0x25d   :  { %v342_v6 = vpop.xlane.xlu2 %341 }
 0x25e   :  { %v346_v7 = vmul.f32 %v342_v6, %v329_v54 }
 0x260   :  { %v582_v8 = vpop.eup %581  ;;  %v349_v9 = vadd.f32 1e-05, %v346_v7 }
 0x261   :  { %v352_v10 = vmul.f32 %v582_v8, %v348_v5  ;;  %vm358_vm1 = vweird.f32 %v582_v8 }
 0x262   :  { %583 = vrsqrt.f32 %v349_v9  ;;  %vm359_vm3 = vmor %vm357_vm2, %vm358_vm1  ;;  %vm367_vm5 = vweird.f32 %v349_v9 }
 0x263   :  { %v353_v11 = vmul.f32 %v582_v8, %v352_v10 }
 0x265   :  { %v354_v12 = vmul.f32 0.5, %v353_v11  ;;  %v344_v13 = vpop.xlane.xlu2 %343 }
 0x266   :  { %v347_v14 = vmul.f32 %v344_v13, %v329_v54 }
 0x267   :  { %v355_v15 = vsub.f32 1.5, %v354_v12 }
 0x268   :  { %v584_v16 = vpop.eup %583  ;;  %v350_v17 = vadd.f32 1e-05, %v347_v14 }
 0x269   :  { %v356_v18 = vmul.f32 %v582_v8, %v355_v15  ;;  %v362_v19 = vmul.f32 %v584_v16, %v349_v9  ;;  %vm368_vm4 = vweird.f32 %v584_v16 }
 0x26a   :  { %585 = vrsqrt.f32 %v350_v17  ;;  %vm369_vm6 = vmor %vm367_vm5, %vm368_vm4  ;;  %vm377_vm8 = vweird.f32 %v350_v17 }
 0x26b   :  { %v360_v21 = vsel %vm359_vm3, %v582_v8, %v356_v18  ;;  %v363_v22 = vmul.f32 %v584_v16, %v362_v19 }
 0x26c   :  { %v381_v23 = vmul.f32 %v360_v21, %v333_v57 }
 0x26d   :  { %v364_v25 = vmul.f32 0.5, %v363_v22 }
 0x26e   :  { %v386_v26 = vmul.f32 %v577_v20, %v381_v23 }
 0x26f   :  { %v365_v27 = vsub.f32 1.5, %v364_v25 }
 0x270   :  { %v586_v28 = vpop.eup %585  ;;  %v391_v29 = vadd.f32 %v578_v24, %v386_v26 }
 0x271   :  { %v366_v30 = vmul.f32 %v584_v16, %v365_v27  ;;  %v372_v31 = vmul.f32 %v586_v28, %v350_v17  ;;  %vm378_vm7 = vweird.f32 %v586_v28 }
 0x272   :  { %394 = vst [vmem:[#allocation15] sm:$0xff] %v391_v29  ;;  %vm379_vm9 = vmor %vm377_vm8, %vm378_vm7 }
 0x273   :  { %v370_v32 = vsel %vm369_vm6, %v584_v16, %v366_v30  ;;  %v373_v33 = vmul.f32 %v586_v28, %v372_v31 }
 0x274   :  { %v382_v34 = vmul.f32 %v370_v32, %v334_v62 }
 0x275   :  { %v374_v35 = vmul.f32 0.5, %v373_v33 }
 0x276   :  { %v387_v36 = vmul.f32 %v577_v20, %v382_v34 }
 0x277   :  { %v375_v37 = vsub.f32 1.5, %v374_v35 }
 0x278   :  { %v392_v38 = vadd.f32 %v578_v24, %v387_v36 }
 0x279   :  { %v376_v39 = vmul.f32 %v586_v28, %v375_v37 }
 0x27a   :  { %395 = vst [vmem:[#allocation15 + $0x8] sm:$0xff] %v392_v38 }
 0x27b   :  { %v380_v40 = vsel %vm379_vm9, %v586_v28, %v376_v39 }
 0x27c   :  { %v383_v41 = vmul.f32 %v380_v40, %v335_v1 }
 0x27e   :  { %v388_v42 = vmul.f32 %v577_v20, %v383_v41 }
 0x280   :  { %v393_v43 = vadd.f32 %v578_v24, %v388_v42 }
 0x282   :  { %396 = vst [vmem:[#allocation15 + $0x10] sm:$0xff] %v393_v43 }
 0x283   :  { %409 = dma.vmem_to_hbm [thread:$0]  %s402_s18, 384, %s404_s3, [#allocation8], %s800_s12, %s800_s12, %s801_s13  }
 0x284   :  { %779 = dma.done.wait [#allocation8], 384  }
 0x285   :  { %780 = vsyncadd [#allocation8], 4294966912 }
 0x286   :  { %414 = vsyncpa [#allocation7], 1 }
 0x287   :  { %415 = vsyncpa [#allocation10], 1 }
 0x288   :  { %416 = vsyncpa [#allocation13], 1 }
 0x289   :  { %417 = vsyncpa [#allocation8], 1 }

</bundles_post_ra>
